<compile_context>
chip_gen: v7x
topology: tpu7x:2x2x1
jax: 0.10.0
libtpu: 0.0.40
codegen_flags: <defaults>
</compile_context>

<pallas_src>
import functools
import math

import jax
import jax.numpy as jnp
from jax.experimental import pallas as pl
from jax.experimental.pallas import tpu as pltpu


def _gconv_kernel(x_ref, a_ref, w_ref, b_ref, o_ref, *, num_groups, cout):
    # x_ref: (tb*N, Cin)           a_ref: (G, tb*N, tb*N)  = I_tb ⊗ A[g]
    # w_ref: (G, Cin, Cout)        b_ref: (1, Cout) f32
    # o_ref: (tb*N, Cout)
    x = x_ref[...]
    acc = jnp.zeros((x.shape[0], cout), dtype=jnp.float32)
    # G is tiny (e.g. 3): static unroll of 2*G MXU matmuls, no slices, no
    # element shuffling.
    for g in range(num_groups):
        # fc for group g (K = Cin), accumulate in f32.
        h = jnp.dot(x, w_ref[g], preferred_element_type=jnp.float32)
        # Graph step + group sum via block-diagonal adjacency on the natural
        # (batch*node, channel) layout; cast h back to the (possibly bf16)
        # compute dtype so the MXU inputs stay narrow, accumulate in f32.
        acc = acc + jnp.dot(a_ref[g], h.astype(x.dtype),
                            preferred_element_type=jnp.float32)
    o_ref[...] = (acc + b_ref[...]).astype(o_ref.dtype)


class GConvPallas:
    """Pallas TPU GConv (AGC-LSTM graph conv), eval path (dropout = identity).

    All static parameter relayouts are done once here (module init), per the
    perf review; __call__ only reshapes x (free) and launches the kernel.
    """

    def __init__(self, A, W, bias=None, *, tb=8, compute_dtype=jnp.float32):
        self.G, self.N, _ = A.shape
        self.Cin = W.shape[1]
        self.Cout = W.shape[0] // self.G
        self.tb = int(tb)
        self.compute_dtype = compute_dtype

        # fc weight as (G, Cin, Cout): per-group right-multiply matrices.
        w3 = jnp.transpose(W.reshape(self.G, self.Cout, self.Cin), (0, 2, 1))
        self.w3 = w3.astype(compute_dtype)

        # Block-diagonal adjacency I_tb ⊗ A[g]: lets the per-batch graph step
        # and the group sum run as plain 2-D matmuls with no in-kernel
        # relayouts and no output unpack. Built once at init.
        eye = jnp.eye(self.tb, dtype=A.dtype)
        abig = jnp.einsum("ij,gnm->ginjm", eye, A)
        self.abig = abig.reshape(
            self.G, self.tb * self.N, self.tb * self.N).astype(compute_dtype)

        if bias is None:
            bias = jnp.zeros((self.Cout,), jnp.float32)
        self.b2 = bias.reshape(1, self.Cout).astype(jnp.float32)

    def __call__(self, x):
        leading = x.shape[:-2]
        N, Cin = x.shape[-2:]
        assert N == self.N and Cin == self.Cin, (x.shape, self.N, self.Cin)
        out_dtype = x.dtype
        B = int(math.prod(leading)) if leading else 1

        # Free reshape to the natural (batch*node, channel) layout (+ optional
        # bf16 cast of x for v6e/v7x).
        xf = x.reshape(B * N, Cin).astype(self.compute_dtype)

        tb = self.tb
        pad = (-B) % tb
        if pad:
            # Rare fallback only; the default tb divides typical batches so the
            # common path does not pay this extra copy of x.
            xf = jnp.concatenate(
                [xf, jnp.zeros((pad * N, Cin), xf.dtype)], axis=0)
        num_tiles = (B + pad) // tb
        rows = tb * N

        out = pl.pallas_call(
            functools.partial(_gconv_kernel, num_groups=self.G, cout=self.Cout),
            out_shape=jax.ShapeDtypeStruct(((B + pad) * N, self.Cout), out_dtype),
            grid=(num_tiles,),
            in_specs=[
                pl.BlockSpec((rows, Cin), lambda i: (i, 0)),
                # Invariant operands: constant index_map -> fetched once,
                # resident in VMEM across all grid steps.
                pl.BlockSpec(self.abig.shape, lambda i: (0, 0, 0)),
                pl.BlockSpec(self.w3.shape, lambda i: (0, 0, 0)),
                pl.BlockSpec(self.b2.shape, lambda i: (0, 0)),
            ],
            out_specs=pl.BlockSpec((rows, self.Cout), lambda i: (i, 0)),
            compiler_params=pltpu.CompilerParams(
                dimension_semantics=("parallel",)),
        )(xf, self.abig, self.w3, self.b2)

        if pad:
            out = out[:B * N]
        # Free reshape back; no transpose / unpack needed.
        return out.reshape(leading + (N, self.Cout))


def gconv_reference(x, A, W, bias):
    """Pure-JAX mirror of the PyTorch forward, for correctness checking."""
    G = A.shape[0]
    h = jnp.einsum("...nc,oc->...no", x, W)                      # fc
    h = h.reshape(h.shape[:-1] + (G, -1))                        # (..., N, G, Cout)
    h = jnp.swapaxes(h, -3, -2)                                  # (..., G, N, Cout)
    h = jnp.einsum("gnm,...gmo->...gno", A, h)                   # A @ h
    h = jnp.sum(h, axis=-3)                                      # sum over groups
    return h + bias


if __name__ == "__main__":
    # Small shapes consistent with AGC-LSTM usage: x has leading (batch, T) dims.
    batch, T = 2, 4
    N = 16          # num_nodes
    Cin = 8         # in_channels
    Cout = 16       # out_channels
    G = 3           # num_groups (A.shape[0])

    key = jax.random.PRNGKey(0)
    kx, ka, kw, kb = jax.random.split(key, 4)

    x = jax.random.normal(kx, (batch, T, N, Cin), dtype=jnp.float32)

    # Row-normalized adjacency ("normalized adjacent matrix").
    A_raw = jax.random.uniform(ka, (G, N, N), dtype=jnp.float32)
    A = A_raw / jnp.sum(A_raw, axis=-1, keepdims=True)

    # nn.Linear-style weight (Cout*G, Cin) + matching bias bound.
    w_bound = 1.0 / math.sqrt(Cin)
    W = jax.random.uniform(kw, (Cout * G, Cin), minval=-w_bound, maxval=w_bound,
                           dtype=jnp.float32)
    bias = jax.random.uniform(kb, (Cout,), minval=-w_bound, maxval=w_bound,
                              dtype=jnp.float32)

    ref = gconv_reference(x, A, W, bias)

    # f32 path (exact module numerics). B = 8 -> single grid step.
    mod = GConvPallas(A, W, bias, tb=8)
    out = jax.block_until_ready(mod(x))
    assert out.shape == (batch, T, N, Cout), out.shape
    assert jnp.allclose(out, ref, atol=1e-5, rtol=1e-5), \
        float(jnp.max(jnp.abs(out - ref)))

    # Larger flattened batch -> multi-tile grid (4 steps: feeds both v7x TCs,
    # and the BlockSpec pipeline overlaps x-in / out-out DMAs with compute).
    x2 = jax.random.normal(jax.random.PRNGKey(1), (2, 16, N, Cin), dtype=jnp.float32)
    ref2 = gconv_reference(x2, A, W, bias)
    out2 = jax.block_until_ready(mod(x2))
    assert out2.shape == (2, 16, N, Cout), out2.shape
    assert jnp.allclose(out2, ref2, atol=1e-5, rtol=1e-5), \
        float(jnp.max(jnp.abs(out2 - ref2)))

    # Non-divisible batch exercises the (rare) padding fallback path.
    x3 = jax.random.normal(jax.random.PRNGKey(2), (3, N, Cin), dtype=jnp.float32)
    ref3 = gconv_reference(x3, A, W, bias)
    out3 = jax.block_until_ready(mod(x3))
    assert out3.shape == (3, N, Cout), out3.shape
    assert jnp.allclose(out3, ref3, atol=1e-5, rtol=1e-5), \
        float(jnp.max(jnp.abs(out3 - ref3)))

    # bf16-input path (perf review, v6e/v7x): halves HBM/VMEM traffic, keeps
    # f32 MXU accumulation -> loose tolerance vs. the f32 reference.
    mod_bf16 = GConvPallas(A, W, bias, tb=8, compute_dtype=jnp.bfloat16)
    out_bf16 = jax.block_until_ready(mod_bf16(x))
    assert out_bf16.shape == (batch, T, N, Cout), out_bf16.shape
    assert jnp.allclose(out_bf16, ref, atol=1e-1, rtol=1e-1), \
        float(jnp.max(jnp.abs(out_bf16 - ref)))

    print("KERNEL_OK")
</pallas_src>

<mosaic_0001>
module attributes {stable_mosaic.version = 11 : i64} {
  func.func @_gconv_kernel(%arg0: i32, %arg1: memref<128x8xf32, #tpu.memory_space<vmem>>, %arg2: memref<3x128x128xf32, #tpu.memory_space<vmem>>, %arg3: memref<3x8x16xf32, #tpu.memory_space<vmem>>, %arg4: memref<1x16xf32, #tpu.memory_space<vmem>>, %arg5: memref<128x16xf32, #tpu.memory_space<vmem>>) attributes {dimension_semantics = [#tpu.dimension_semantics<parallel>], iteration_bounds = array<i64: 1>, scalar_prefetch = 0 : i64, scratch_operands = 0 : i64, tpu.core_type = #tpu.core_type<tc>, window_params = [{transform_indices = @transform_0, window_bounds = array<i64: 128, 8>}, {pipeline_mode = #tpu.pipeline_mode<synchronous>, transform_indices = @transform_1, window_bounds = array<i64: 3, 128, 128>}, {pipeline_mode = #tpu.pipeline_mode<synchronous>, transform_indices = @transform_2, window_bounds = array<i64: 3, 8, 16>}, {pipeline_mode = #tpu.pipeline_mode<synchronous>, transform_indices = @transform_3, window_bounds = array<i64: 1, 16>}, {transform_indices = @transform_4, window_bounds = array<i64: 128, 16>}]} {
    %c0 = arith.constant 0 : index
    %c0_0 = arith.constant 0 : index
    %0 = vector.load %arg1[%c0, %c0_0] : memref<128x8xf32, #tpu.memory_space<vmem>>, vector<128x8xf32>
    %cst = arith.constant 0.000000e+00 : f32
    %1 = vector.broadcast %cst : f32 to vector<128x16xf32>
    %c0_1 = arith.constant 0 : index
    %c0_2 = arith.constant 0 : index
    %c0_3 = arith.constant 0 : index
    %2 = vector.load %arg3[%c0_1, %c0_2, %c0_3] : memref<3x8x16xf32, #tpu.memory_space<vmem>>, vector<1x8x16xf32>
    %3 = vector.shape_cast %2 : vector<1x8x16xf32> to vector<8x16xf32>
    %cst_4 = arith.constant dense<0.000000e+00> : vector<128x16xf32>
    %4 = tpu.matmul %0, %3, %cst_4 {dimension_numbers = #tpu.dot_dimension_numbers<[1], [0], [0], [1], [0, 0, 1, 1], [], []>} : vector<128x8xf32>, vector<8x16xf32>, vector<128x16xf32> -> vector<128x16xf32>
    %c0_5 = arith.constant 0 : index
    %c0_6 = arith.constant 0 : index
    %c0_7 = arith.constant 0 : index
    %5 = vector.load %arg2[%c0_5, %c0_6, %c0_7] : memref<3x128x128xf32, #tpu.memory_space<vmem>>, vector<1x128x128xf32>
    %6 = vector.shape_cast %5 : vector<1x128x128xf32> to vector<128x128xf32>
    %cst_8 = arith.constant dense<0.000000e+00> : vector<128x16xf32>
    %7 = tpu.matmul %6, %4, %cst_8 {dimension_numbers = #tpu.dot_dimension_numbers<[1], [0], [0], [1], [0, 0, 1, 1], [], []>} : vector<128x128xf32>, vector<128x16xf32>, vector<128x16xf32> -> vector<128x16xf32>
    %8 = arith.addf %1, %7 : vector<128x16xf32>
    %c1 = arith.constant 1 : index
    %c0_9 = arith.constant 0 : index
    %c0_10 = arith.constant 0 : index
    %9 = vector.load %arg3[%c1, %c0_9, %c0_10] : memref<3x8x16xf32, #tpu.memory_space<vmem>>, vector<1x8x16xf32>
    %10 = vector.shape_cast %9 : vector<1x8x16xf32> to vector<8x16xf32>
    %cst_11 = arith.constant dense<0.000000e+00> : vector<128x16xf32>
    %11 = tpu.matmul %0, %10, %cst_11 {dimension_numbers = #tpu.dot_dimension_numbers<[1], [0], [0], [1], [0, 0, 1, 1], [], []>} : vector<128x8xf32>, vector<8x16xf32>, vector<128x16xf32> -> vector<128x16xf32>
    %c1_12 = arith.constant 1 : index
    %c0_13 = arith.constant 0 : index
    %c0_14 = arith.constant 0 : index
    %12 = vector.load %arg2[%c1_12, %c0_13, %c0_14] : memref<3x128x128xf32, #tpu.memory_space<vmem>>, vector<1x128x128xf32>
    %13 = vector.shape_cast %12 : vector<1x128x128xf32> to vector<128x128xf32>
    %cst_15 = arith.constant dense<0.000000e+00> : vector<128x16xf32>
    %14 = tpu.matmul %13, %11, %cst_15 {dimension_numbers = #tpu.dot_dimension_numbers<[1], [0], [0], [1], [0, 0, 1, 1], [], []>} : vector<128x128xf32>, vector<128x16xf32>, vector<128x16xf32> -> vector<128x16xf32>
    %15 = arith.addf %8, %14 : vector<128x16xf32>
    %c2 = arith.constant 2 : index
    %c0_16 = arith.constant 0 : index
    %c0_17 = arith.constant 0 : index
    %16 = vector.load %arg3[%c2, %c0_16, %c0_17] : memref<3x8x16xf32, #tpu.memory_space<vmem>>, vector<1x8x16xf32>
    %17 = vector.shape_cast %16 : vector<1x8x16xf32> to vector<8x16xf32>
    %cst_18 = arith.constant dense<0.000000e+00> : vector<128x16xf32>
    %18 = tpu.matmul %0, %17, %cst_18 {dimension_numbers = #tpu.dot_dimension_numbers<[1], [0], [0], [1], [0, 0, 1, 1], [], []>} : vector<128x8xf32>, vector<8x16xf32>, vector<128x16xf32> -> vector<128x16xf32>
    %c2_19 = arith.constant 2 : index
    %c0_20 = arith.constant 0 : index
    %c0_21 = arith.constant 0 : index
    %19 = vector.load %arg2[%c2_19, %c0_20, %c0_21] : memref<3x128x128xf32, #tpu.memory_space<vmem>>, vector<1x128x128xf32>
    %20 = vector.shape_cast %19 : vector<1x128x128xf32> to vector<128x128xf32>
    %cst_22 = arith.constant dense<0.000000e+00> : vector<128x16xf32>
    %21 = tpu.matmul %20, %18, %cst_22 {dimension_numbers = #tpu.dot_dimension_numbers<[1], [0], [0], [1], [0, 0, 1, 1], [], []>} : vector<128x128xf32>, vector<128x16xf32>, vector<128x16xf32> -> vector<128x16xf32>
    %22 = arith.addf %15, %21 : vector<128x16xf32>
    %c0_23 = arith.constant 0 : index
    %c0_24 = arith.constant 0 : index
    %23 = vector.load %arg4[%c0_23, %c0_24] : memref<1x16xf32, #tpu.memory_space<vmem>>, vector<1x16xf32>
    %24 = vector.broadcast %23 : vector<1x16xf32> to vector<128x16xf32>
    %25 = arith.addf %22, %24 : vector<128x16xf32>
    %c0_25 = arith.constant 0 : index
    %c0_26 = arith.constant 0 : index
    %26 = vector.load %arg5[%c0_25, %c0_26] : memref<128x16xf32, #tpu.memory_space<vmem>>, vector<128x16xf32>
    tpu.vector_store %arg5[%c0_25, %c0_26], %25 {strides = array<i32>} : memref<128x16xf32, #tpu.memory_space<vmem>>, vector<128x16xf32>,
    return
  }
  func.func @transform_0(%arg0: i32) -> (i32, i32) {
    %c0_i32 = arith.constant 0 : i32
    %c0_i32_0 = arith.constant 0 : i32
    return %arg0, %c0_i32 : i32, i32
  }
  func.func @transform_1(%arg0: i32) -> (i32, i32, i32) {
    %c0_i32 = arith.constant 0 : i32
    %c0_i32_0 = arith.constant 0 : i32
    %c0_i32_1 = arith.constant 0 : i32
    %c0_i32_2 = arith.constant 0 : i32
    return %c0_i32, %c0_i32_0, %c0_i32_1 : i32, i32, i32
  }
  func.func @transform_2(%arg0: i32) -> (i32, i32, i32) {
    %c0_i32 = arith.constant 0 : i32
    %c0_i32_0 = arith.constant 0 : i32
    %c0_i32_1 = arith.constant 0 : i32
    %c0_i32_2 = arith.constant 0 : i32
    return %c0_i32, %c0_i32_0, %c0_i32_1 : i32, i32, i32
  }
  func.func @transform_3(%arg0: i32) -> (i32, i32) {
    %c0_i32 = arith.constant 0 : i32
    %c0_i32_0 = arith.constant 0 : i32
    %c0_i32_1 = arith.constant 0 : i32
    return %c0_i32, %c0_i32_0 : i32, i32
  }
  func.func @transform_4(%arg0: i32) -> (i32, i32) {
    %c0_i32 = arith.constant 0 : i32
    %c0_i32_0 = arith.constant 0 : i32
    return %arg0, %c0_i32 : i32, i32
  }
}

</mosaic_0001>

<bundles_post_ra>
// kernel: tpu_custom_call.1
= control target key start
LH: loop header
LB: loop body
LE: loop exit
PB: predicated region body
PF: predicated region fallthrough
CT: control target
= control target key end

     0   :  { %9 = vsyncpa [#allocation3], 0  ;;  %s1681_s15 = smov [#allocation2]   ;;  %s2021_s0 = inlined_call_operand.vmem [shape: f32[128,8], index: 0, kind: input, shape index: {}]   ;;  %s2022_s1 = inlined_call_operand.hbm [shape: f32[3,128,128], index: 1, kind: input, shape index: {}]   ;;  %s2023_s2 = inlined_call_operand.vmem [shape: f32[3,8,16], index: 2, kind: input, shape index: {}]   ;;  %s2024_s3 = inlined_call_operand.vmem [shape: f32[1,16], index: 3, kind: input, shape index: {}]   ;;  %s2025_s4 = inlined_call_operand.vmem [shape: f32[128,16], index: 4, kind: output, shape index: {}]  }
   0x1   :  { %s17_s16 = sshll.u32 %s1681_s15, 4  ;;  %s1657_s19 = scalar_lea.hbm %s2022_s1, 6144  ;;  %s18_s16 = int_to_ptr.vmem [resolvable:$true] %s17_s16 }
   0x2   :  { %p1658_p0 = scmp.ne.s32.totalorder %s2022_s1, %s1657_s19  ;;  %p1661_p1 = scmp.lt.u32.totalorder %s1657_s19, %s2022_s1 }
   0x4   :  { %p1663_p2 = pnand %p1661_p1, %p1658_p0 }
   0x6   :  { %1666 = shalt.err (!%p1663_p2)
}
   0x7   :  { %s1667_s24 = scalar_lea.vmem %s18_s16, 6144  ;;  %p1672_p4 = scmp.lt.s32.totalorder %s18_s16, %s18_s16 }
   0x8   :  { %p1668_p3 = scmp.ne.s32.totalorder %s18_s16, %s1667_s24  ;;  %p1673_p5 = scmp.lt.s32.totalorder %s1667_s24, %s1667_s24 }
   0xa   :  { %p1674_p6 = por %p1673_p5, %p1672_p4 }
   0xc   :  { %p1675_p7 = pnand %p1674_p6, %p1668_p3 }
   0xe   :  { %1678 = shalt.err (!%p1675_p7)
}
   0xf   :  { %s1682_s25 = smov 128   ;;  %s1683_s26 = smov 8  }
  0x10   :  { %23 = dma.hbm_to_vmem [thread:$0]  %s2022_s1, 6144, %s18_s16, [#allocation3], %s1682_s25, %s1682_s25, %s1683_s26  }
  0x11   :  { %1679 = dma.done.wait [#allocation3], 6144  }
  0x12   :  { %1680 = vsyncadd [#allocation3], 4294961152  ;;  %vm48_vm0 = vcmask 64512   ;;  %v1098_v0 = vld [vmem:[%s2023_s2 + $0x8] sm:$0xff]  ;;  %v1727_v1 = vld [vmem:[%s2021_s0] sm:$0xff]  ;;  %vm1060_vm1 = vcmask 130048  }
  0x13   :  { %v1732_v2 = vld [vmem:[%s2021_s0 + $0x8] sm:$0xff]  ;;  %1306 = vmatprep.subr.mxu1 %v1098_v0  ;;  %1308 = vmatprep.mubr.msk.f32.mxu1 %vm48_vm0, %v1727_v1  ;;  %v1739_v3 = vld [vmem:[%s2021_s0 + $0x10] sm:$0xff]  ;;  %v1750_v4 = vld [vmem:[%s2021_s0 + $0x18] sm:$0xff] }
  0x14   :  { %1307 = vmatpush3.msra.mxu1 %v1098_v0  ;;  %1282 = vmatprep.mubr.msk.f32.mxu0 %vm48_vm0, %v1727_v1  ;;  %v1755_v5 = vld [vmem:[%s2021_s0 + $0x20] sm:$0xff]  ;;  %v1764_v6 = vld [vmem:[%s2021_s0 + $0x28] sm:$0xff]  ;;  %v1769_v7 = vld [vmem:[%s2021_s0 + $0x30] sm:$0xff] }
  0x15   :  { %1309 = vmatmul.mubr.msk.f32.vlgmr.msra.gmra.mrb[0].mxu1 %vm48_vm0, %v1732_v2  ;;  %v1778_v8 = vld [vmem:[%s2021_s0 + $0x38] sm:$0xff]  ;;  %v1783_v9 = vld [vmem:[%s2021_s0 + $0x40] sm:$0xff]  ;;  %v1792_v10 = vld [vmem:[%s2021_s0 + $0x48] sm:$0xff] }
  0x16   :  { %1311 = vmatprep.mubr.msk.f32.mxu1 %vm48_vm0, %v1739_v3  ;;  %v1797_v11 = vld [vmem:[%s2021_s0 + $0x50] sm:$0xff]  ;;  %v1806_v12 = vld [vmem:[%s2021_s0 + $0x58] sm:$0xff]  ;;  %v1811_v13 = vld [vmem:[%s2021_s0 + $0x60] sm:$0xff] }
  0x17   :  { %v1820_v14 = vld [vmem:[%s2021_s0 + $0x68] sm:$0xff]  ;;  %v1825_v15 = vld [vmem:[%s2021_s0 + $0x70] sm:$0xff]  ;;  %v1834_v16 = vld [vmem:[%s2021_s0 + $0x78] sm:$0xff] }
  0x18   :  { %v47_v17 = vld [vmem:[%s2023_s2] sm:$0xff]  ;;  %v1115_v43 = vld [vmem:[%s2023_s2 + $0x10] sm:$0xff]  ;;  %v407_v44 = vld [vmem:[#allocation2 + $0x88] sm:$0xff] }
  0x19   :  { %1312 = vmatmul.mubr.msk.f32.gmra.mrb[2].mxu1 %vm48_vm0, %v1750_v4  ;;  %1280 = vmatprep.subr.mxu0 %v47_v17  ;;  %v406_v18 = vld [vmem:[#allocation2 + $0x80] sm:$0xff]  ;;  %v408_v45 = vld [vmem:[#allocation2 + $0x90] sm:$0xff]  ;;  %v409_v46 = vld [vmem:[#allocation2 + $0x98] sm:$0xff] }
  0x1a   :  { %1314 = vmatprep.mubr.msk.f32.mxu1 %vm48_vm0, %v1755_v5  ;;  %1281 = vmatpush3.msra.mxu0 %v47_v17  ;;  %v410_v47 = vld [vmem:[#allocation2 + $0xa0] sm:$0xff]  ;;  %v411_v48 = vld [vmem:[#allocation2 + $0xa8] sm:$0xff]  ;;  %v412_v49 = vld [vmem:[#allocation2 + $0xb0] sm:$0xff] }
  0x1b   :  { %1283 = vmatmul.mubr.msk.f32.vlgmr.msra.gmra.mrb[0].mxu0 %vm48_vm0, %v1732_v2  ;;  %v413_v50 = vld [vmem:[#allocation2 + $0xb8] sm:$0xff]  ;;  %v414_v51 = vld [vmem:[#allocation2 + $0xc0] sm:$0xff]  ;;  %v415_v52 = vld [vmem:[#allocation2 + $0xc8] sm:$0xff] }
  0x1c   :  { %1285 = vmatprep.mubr.msk.f32.mxu0 %vm48_vm0, %v1739_v3  ;;  %v416_v53 = vld [vmem:[#allocation2 + $0xd0] sm:$0xff]  ;;  %v417_v54 = vld [vmem:[#allocation2 + $0xd8] sm:$0xff]  ;;  %v418_v55 = vld [vmem:[#allocation2 + $0xe0] sm:$0xff] }
  0x1d   :  { %1315 = vmatmul.mubr.msk.f32.gmra.mrb[4].mxu1 %vm48_vm0, %v1764_v6  ;;  %v419_v56 = vld [vmem:[#allocation2 + $0xe8] sm:$0xff]  ;;  %v420_v57 = vld [vmem:[#allocation2 + $0xf0] sm:$0xff]  ;;  %v421_v58 = vld [vmem:[#allocation2 + $0xf8] sm:$0xff] }
  0x1e   :  { %1317 = vmatprep.mubr.msk.f32.mxu1 %vm48_vm0, %v1769_v7 }
  0x1f   :  { %1286 = vmatmul.mubr.msk.f32.gmra.mrb[2].mxu0 %vm48_vm0, %v1750_v4 }
  0x20   :  { %1288 = vmatprep.mubr.msk.f32.mxu0 %vm48_vm0, %v1755_v5 }
  0x21   :  { %1318 = vmatmul.mubr.msk.f32.gmra.mrb[6].mxu1 %vm48_vm0, %v1778_v8 }
  0x22   :  { %1320 = vmatprep.mubr.msk.f32.mxu1 %vm48_vm0, %v1783_v9 }
  0x23   :  { %1289 = vmatmul.mubr.msk.f32.gmra.mrb[4].mxu0 %vm48_vm0, %v1764_v6 }
  0x24   :  { %1291 = vmatprep.mubr.msk.f32.mxu0 %vm48_vm0, %v1769_v7 }
  0x25   :  { %1321 = vmatmul.mubr.msk.f32.gmra.mrb[8].mxu1 %vm48_vm0, %v1792_v10 }
  0x26   :  { %1323 = vmatprep.mubr.msk.f32.mxu1 %vm48_vm0, %v1797_v11 }
  0x27   :  { %1292 = vmatmul.mubr.msk.f32.gmra.mrb[6].mxu0 %vm48_vm0, %v1778_v8 }
  0x28   :  { %1294 = vmatprep.mubr.msk.f32.mxu0 %vm48_vm0, %v1783_v9 }
  0x29   :  { %1324 = vmatmul.mubr.msk.f32.gmra.mrb[10].mxu1 %vm48_vm0, %v1806_v12 }
  0x2a   :  { %1326 = vmatprep.mubr.msk.f32.mxu1 %vm48_vm0, %v1811_v13 }
  0x2b   :  { %1295 = vmatmul.mubr.msk.f32.gmra.mrb[8].mxu0 %vm48_vm0, %v1792_v10 }
  0x2c   :  { %1297 = vmatprep.mubr.msk.f32.mxu0 %vm48_vm0, %v1797_v11 }
  0x2d   :  { %1327 = vmatmul.mubr.msk.f32.gmra.mrb[12].mxu1 %vm48_vm0, %v1820_v14 }
  0x2e   :  { %1329 = vmatprep.mubr.msk.f32.mxu1 %vm48_vm0, %v1825_v15 }
  0x2f   :  { %1298 = vmatmul.mubr.msk.f32.gmra.mrb[10].mxu0 %vm48_vm0, %v1806_v12 }
  0x30   :  { %1300 = vmatprep.mubr.msk.f32.mxu0 %vm48_vm0, %v1811_v13 }
  0x31   :  { %1330 = vmatmul.mubr.msk.f32.gmra.mrb[14].mxu1 %vm48_vm0, %v1834_v16 }
  0x32   :  { %1364 = vmatprep.mubr.f32.mxu1 %v406_v18 }
  0x33   :  { %1301 = vmatmul.mubr.msk.f32.gmra.mrb[12].mxu0 %vm48_vm0, %v1820_v14 }
  0x34   :  { %1303 = vmatprep.mubr.msk.f32.mxu0 %vm48_vm0, %v1825_v15 }
  0x37   :  { %1304 = vmatmul.mubr.msk.f32.gmra.mrb[14].mxu0 %vm48_vm0, %v1834_v16 }
  0xe8   :  { %v1310_v19 = vpop.f32.mrb[0].mxu1 }
  0xe9   :  { %v326_v20 = vpop.f32.mrb[1].mxu1 }
  0xea   :  { %v1526_v21 = vpack.c.bf16 %v1310_v19, %v326_v20  ;;  %v242_v19 = vld [vmem:[#allocation2] sm:$0xff]  ;;  %v243_v20 = vld [vmem:[#allocation2 + $0x8] sm:$0xff] }
  0xeb   :  { %1420 = vmatprep.mubr.f32.mxu0 %v242_v19  ;;  %v868_v19 = vld [vmem:[#allocation2 + $0x140] sm:$0xff] }
  0xec   :  { %v1313_v22 = vpop.f32.mrb[2].mxu1  ;;  %1527 = vmatprep.subr.bf16.mxu1 %v1526_v21 }
  0xed   :  { %v336_v23 = vpop.f32.mrb[3].mxu1  ;;  %1529 = vmatpush3.bf16.msra.mxu1 %v1526_v21  ;;  %v244_v21 = vld [vmem:[#allocation2 + $0x10] sm:$0xff] }
  0xee   :  { %v1530_v24 = vpack.c.bf16 %v1313_v22, %v336_v23  ;;  %v1284_v59 = vpop.f32.mrb[0].mxu0  ;;  %v245_v22 = vld [vmem:[#allocation2 + $0x18] sm:$0xff]  ;;  %v246_v23 = vld [vmem:[#allocation2 + $0x20] sm:$0xff] }
  0xef   :  { %v163_v60 = vpop.f32.mrb[1].mxu0 }
  0xf0   :  { %v1316_v25 = vpop.f32.mrb[4].mxu1  ;;  %1531 = vmatprep.subr.bf16.mxu1 %v1530_v24  ;;  %v1558_v61 = vpack.c.bf16 %v1284_v59, %v163_v60 }
  0xf1   :  { %v346_v26 = vpop.f32.mrb[5].mxu1  ;;  %1533 = vmatpush3.bf16.msra.mxu1 %v1530_v24  ;;  %v247_v24 = vld [vmem:[#allocation2 + $0x28] sm:$0xff] }
  0xf2   :  { %v1534_v27 = vpack.c.bf16 %v1316_v25, %v346_v26  ;;  %v1287_v62 = vpop.f32.mrb[2].mxu0  ;;  %1559 = vmatprep.subr.bf16.mxu0 %v1558_v61  ;;  %v248_v25 = vld [vmem:[#allocation2 + $0x30] sm:$0xff]  ;;  %v249_v26 = vld [vmem:[#allocation2 + $0x38] sm:$0xff] }
  0xf3   :  { %v173_v63 = vpop.f32.mrb[3].mxu0  ;;  %1561 = vmatpush3.bf16.msra.mxu0 %v1558_v61 }
  0xf4   :  { %v1319_v28 = vpop.f32.mrb[6].mxu1  ;;  %1535 = vmatprep.subr.bf16.mxu1 %v1534_v27  ;;  %v1562_v0 = vpack.c.bf16 %v1287_v62, %v173_v63 }
  0xf5   :  { %v356_v29 = vpop.f32.mrb[7].mxu1  ;;  %1537 = vmatpush3.bf16.msra.mxu1 %v1534_v27  ;;  %v250_v27 = vld [vmem:[#allocation2 + $0x40] sm:$0xff] }
  0xf6   :  { %v1538_v30 = vpack.c.bf16 %v1319_v28, %v356_v29  ;;  %1563 = vmatprep.subr.bf16.mxu0 %v1562_v0  ;;  %v251_v28 = vld [vmem:[#allocation2 + $0x48] sm:$0xff]  ;;  %v252_v29 = vld [vmem:[#allocation2 + $0x50] sm:$0xff] }
  0xf7   :  { %1565 = vmatpush3.bf16.msra.mxu0 %v1562_v0 }
  0xf8   :  { %v1322_v31 = vpop.f32.mrb[8].mxu1  ;;  %1539 = vmatprep.subr.bf16.mxu1 %v1538_v30 }
  0xf9   :  { %v366_v32 = vpop.f32.mrb[9].mxu1  ;;  %1541 = vmatpush3.bf16.msra.mxu1 %v1538_v30  ;;  %v253_v30 = vld [vmem:[#allocation2 + $0x58] sm:$0xff] }
  0xfa   :  { %v1542_v33 = vpack.c.bf16 %v1322_v31, %v366_v32  ;;  %v254_v31 = vld [vmem:[#allocation2 + $0x60] sm:$0xff]  ;;  %v255_v32 = vld [vmem:[#allocation2 + $0x68] sm:$0xff] }
  0xfc   :  { %v1325_v34 = vpop.f32.mrb[10].mxu1  ;;  %1543 = vmatprep.subr.bf16.mxu1 %v1542_v33 }
  0xfd   :  { %v376_v35 = vpop.f32.mrb[11].mxu1  ;;  %1545 = vmatpush3.bf16.msra.mxu1 %v1542_v33  ;;  %v256_v33 = vld [vmem:[#allocation2 + $0x70] sm:$0xff] }
  0xfe   :  { %v1546_v36 = vpack.c.bf16 %v1325_v34, %v376_v35  ;;  %v257_v34 = vld [vmem:[#allocation2 + $0x78] sm:$0xff]  ;;  %v860_v35 = vld [vmem:[#allocation2 + $0x100] sm:$0xff] }
 0x100   :  { %v1328_v37 = vpop.f32.mrb[12].mxu1  ;;  %1547 = vmatprep.subr.bf16.mxu1 %v1546_v36 }
 0x101   :  { %v386_v38 = vpop.f32.mrb[13].mxu1  ;;  %1549 = vmatpush3.bf16.msra.mxu1 %v1546_v36 }
 0x102   :  { %v1550_v39 = vpack.c.bf16 %v1328_v37, %v386_v38 }
 0x104   :  { %v1331_v40 = vpop.f32.mrb[14].mxu1  ;;  %1551 = vmatprep.subr.bf16.mxu1 %v1550_v39 }
 0x105   :  { %v396_v41 = vpop.f32.mrb[15].mxu1  ;;  %1553 = vmatpush3.bf16.msra.mxu1 %v1550_v39 }
 0x106   :  { %v1554_v42 = vpack.c.bf16 %v1331_v40, %v396_v41 }
 0x108   :  { %1555 = vmatprep.subr.bf16.mxu1 %v1554_v42 }
 0x109   :  { %1557 = vmatpush3.bf16.msra.mxu1 %v1554_v42 }
 0x10a   :  { %1444 = vmatprep.subr.mxu1 %v1115_v43 }
 0x10c   :  { %1365 = vmatmul.mubr.f32.vlgmr.msra.gmra.mrb[16].mxu1 %v407_v44 }
 0x10d   :  { %1445 = vmatpush3.msra.mxu1 %v1115_v43  ;;  %1367 = vmatprep.mubr.f32.mxu1 %v408_v45 }
 0x110   :  { %1368 = vmatmul.mubr.f32.gmra.mrb[18].mxu1 %v409_v46 }
 0x111   :  { %1370 = vmatprep.mubr.f32.mxu1 %v410_v47 }
 0x114   :  { %1371 = vmatmul.mubr.f32.gmra.mrb[20].mxu1 %v411_v48 }
 0x115   :  { %1373 = vmatprep.mubr.f32.mxu1 %v412_v49 }
 0x118   :  { %1374 = vmatmul.mubr.f32.gmra.mrb[22].mxu1 %v413_v50 }
 0x119   :  { %1376 = vmatprep.mubr.f32.mxu1 %v414_v51 }
 0x11c   :  { %1377 = vmatmul.mubr.f32.gmra.mrb[24].mxu1 %v415_v52 }
 0x11d   :  { %1379 = vmatprep.mubr.f32.mxu1 %v416_v53 }
 0x120   :  { %1380 = vmatmul.mubr.f32.gmra.mrb[26].mxu1 %v417_v54 }
 0x121   :  { %1382 = vmatprep.mubr.f32.mxu1 %v418_v55 }
 0x124   :  { %1383 = vmatmul.mubr.f32.gmra.mrb[28].mxu1 %v419_v56 }
 0x125   :  { %1385 = vmatprep.mubr.f32.mxu1 %v420_v57 }
 0x128   :  { %1386 = vmatmul.mubr.f32.gmra.mrb[30].mxu1 %v421_v58 }
 0x129   :  { %1446 = vmatprep.mubr.msk.f32.mxu1 %vm48_vm0, %v1727_v1  ;;  %v1290_v1 = vpop.f32.mrb[4].mxu0 }
 0x12c   :  { %1447 = vmatmul.mubr.msk.f32.vlgmr.msra.gmra.mrb[32].mxu1 %vm48_vm0, %v1732_v2  ;;  %v183_v2 = vpop.f32.mrb[5].mxu0 }
 0x12d   :  { %1449 = vmatprep.mubr.msk.f32.mxu1 %vm48_vm0, %v1739_v3  ;;  %v1566_v3 = vpack.c.bf16 %v1290_v1, %v183_v2 }
 0x12f   :  { %1567 = vmatprep.subr.bf16.mxu0 %v1566_v3 }
 0x130   :  { %1450 = vmatmul.mubr.msk.f32.gmra.mrb[34].mxu1 %vm48_vm0, %v1750_v4  ;;  %v1293_v4 = vpop.f32.mrb[6].mxu0  ;;  %1569 = vmatpush3.bf16.msra.mxu0 %v1566_v3 }
 0x131   :  { %1452 = vmatprep.mubr.msk.f32.mxu1 %vm48_vm0, %v1755_v5  ;;  %v193_v5 = vpop.f32.mrb[7].mxu0 }
 0x134   :  { %1453 = vmatmul.mubr.msk.f32.gmra.mrb[36].mxu1 %vm48_vm0, %v1764_v6  ;;  %v1570_v6 = vpack.c.bf16 %v1293_v4, %v193_v5 }
 0x135   :  { %1455 = vmatprep.mubr.msk.f32.mxu1 %vm48_vm0, %v1769_v7  ;;  %v1296_v7 = vpop.f32.mrb[8].mxu0 }
 0x136   :  { %1571 = vmatprep.subr.bf16.mxu0 %v1570_v6 }
 0x137   :  { %1573 = vmatpush3.bf16.msra.mxu0 %v1570_v6 }
 0x138   :  { %1456 = vmatmul.mubr.msk.f32.gmra.mrb[38].mxu1 %vm48_vm0, %v1778_v8  ;;  %v203_v8 = vpop.f32.mrb[9].mxu0 }
 0x139   :  { %1458 = vmatprep.mubr.msk.f32.mxu1 %vm48_vm0, %v1783_v9  ;;  %v1574_v9 = vpack.c.bf16 %v1296_v7, %v203_v8 }
 0x13b   :  { %1575 = vmatprep.subr.bf16.mxu0 %v1574_v9 }
 0x13c   :  { %1459 = vmatmul.mubr.msk.f32.gmra.mrb[40].mxu1 %vm48_vm0, %v1792_v10  ;;  %v1299_v10 = vpop.f32.mrb[10].mxu0  ;;  %1577 = vmatpush3.bf16.msra.mxu0 %v1574_v9 }
 0x13d   :  { %1461 = vmatprep.mubr.msk.f32.mxu1 %vm48_vm0, %v1797_v11  ;;  %v213_v11 = vpop.f32.mrb[11].mxu0 }
 0x140   :  { %1462 = vmatmul.mubr.msk.f32.gmra.mrb[42].mxu1 %vm48_vm0, %v1806_v12  ;;  %v1578_v12 = vpack.c.bf16 %v1299_v10, %v213_v11 }
 0x141   :  { %1464 = vmatprep.mubr.msk.f32.mxu1 %vm48_vm0, %v1811_v13  ;;  %v1302_v13 = vpop.f32.mrb[12].mxu0 }
 0x142   :  { %1579 = vmatprep.subr.bf16.mxu0 %v1578_v12 }
 0x143   :  { %1581 = vmatpush3.bf16.msra.mxu0 %v1578_v12  ;;  %v861_v12 = vld [vmem:[#allocation2 + $0x108] sm:$0xff] }
 0x144   :  { %1465 = vmatmul.mubr.msk.f32.gmra.mrb[44].mxu1 %vm48_vm0, %v1820_v14  ;;  %v223_v14 = vpop.f32.mrb[13].mxu0 }
 0x145   :  { %1467 = vmatprep.mubr.msk.f32.mxu1 %vm48_vm0, %v1825_v15  ;;  %v1582_v15 = vpack.c.bf16 %v1302_v13, %v223_v14  ;;  %v862_v13 = vld [vmem:[#allocation2 + $0x110] sm:$0xff]  ;;  %v863_v14 = vld [vmem:[#allocation2 + $0x118] sm:$0xff] }
 0x147   :  { %1583 = vmatprep.subr.bf16.mxu0 %v1582_v15 }
 0x148   :  { %1468 = vmatmul.mubr.msk.f32.gmra.mrb[46].mxu1 %vm48_vm0, %v1834_v16  ;;  %v1305_v16 = vpop.f32.mrb[14].mxu0  ;;  %1585 = vmatpush3.bf16.msra.mxu0 %v1582_v15  ;;  %v864_v15 = vld [vmem:[#allocation2 + $0x120] sm:$0xff] }
 0x149   :  { %v233_v17 = vpop.f32.mrb[15].mxu0 }
 0x14a   :  { %v1586_v18 = vpack.c.bf16 %v1305_v16, %v233_v17  ;;  %v865_v16 = vld [vmem:[#allocation2 + $0x128] sm:$0xff]  ;;  %v866_v17 = vld [vmem:[#allocation2 + $0x130] sm:$0xff] }
 0x14c   :  { %1587 = vmatprep.subr.bf16.mxu0 %v1586_v18 }
 0x14d   :  { %1589 = vmatpush3.bf16.msra.mxu0 %v1586_v18  ;;  %v867_v18 = vld [vmem:[#allocation2 + $0x138] sm:$0xff] }
 0x150   :  { %1421 = vmatmul.mubr.f32.vlgmr.msra.gmra.mrb[16].mxu0 %v243_v20  ;;  %v869_v20 = vld [vmem:[#allocation2 + $0x148] sm:$0xff] }
 0x151   :  { %1423 = vmatprep.mubr.f32.mxu0 %v244_v21  ;;  %v870_v21 = vld [vmem:[#allocation2 + $0x150] sm:$0xff] }
 0x154   :  { %1424 = vmatmul.mubr.f32.gmra.mrb[18].mxu0 %v245_v22  ;;  %v871_v22 = vld [vmem:[#allocation2 + $0x158] sm:$0xff] }
 0x155   :  { %1426 = vmatprep.mubr.f32.mxu0 %v246_v23  ;;  %v872_v23 = vld [vmem:[#allocation2 + $0x160] sm:$0xff] }
 0x158   :  { %1427 = vmatmul.mubr.f32.gmra.mrb[20].mxu0 %v247_v24  ;;  %v873_v24 = vld [vmem:[#allocation2 + $0x168] sm:$0xff] }
 0x159   :  { %1429 = vmatprep.mubr.f32.mxu0 %v248_v25  ;;  %v874_v25 = vld [vmem:[#allocation2 + $0x170] sm:$0xff] }
 0x15c   :  { %1430 = vmatmul.mubr.f32.gmra.mrb[22].mxu0 %v249_v26  ;;  %v875_v26 = vld [vmem:[#allocation2 + $0x178] sm:$0xff] }
 0x15d   :  { %1432 = vmatprep.mubr.f32.mxu0 %v250_v27 }
 0x160   :  { %1433 = vmatmul.mubr.f32.gmra.mrb[24].mxu0 %v251_v28  ;;  %v1132_v28 = vld [vmem:[%s2024_s3] ss:$0 sm:$0xff] }
 0x161   :  { %1435 = vmatprep.mubr.f32.mxu0 %v252_v29 }
 0x164   :  { %1436 = vmatmul.mubr.f32.gmra.mrb[26].mxu0 %v253_v30 }
 0x165   :  { %1438 = vmatprep.mubr.f32.mxu0 %v254_v31 }
 0x168   :  { %1439 = vmatmul.mubr.f32.gmra.mrb[28].mxu0 %v255_v32 }
 0x169   :  { %1441 = vmatprep.mubr.f32.mxu0 %v256_v33 }
 0x16c   :  { %1442 = vmatmul.mubr.f32.gmra.mrb[30].mxu0 %v257_v34 }
 0x16d   :  { %1502 = vmatprep.mubr.f32.mxu0 %v860_v35 }
 0x1df   :  { %v1906_v36 = vpop.f32.mrb[16].mxu1 }
 0x1e0   :  { %v1908_v37 = vpop.f32.mrb[17].mxu1 }
 0x1e3   :  { %v1910_v38 = vpop.f32.mrb[18].mxu1 }
 0x1e4   :  { %v1912_v39 = vpop.f32.mrb[19].mxu1 }
 0x1e7   :  { %v1914_v40 = vpop.f32.mrb[20].mxu1 }
 0x1e8   :  { %v1916_v41 = vpop.f32.mrb[21].mxu1 }
 0x1eb   :  { %v1918_v42 = vpop.f32.mrb[22].mxu1 }
 0x1ec   :  { %v1920_v43 = vpop.f32.mrb[23].mxu1 }
 0x1ef   :  { %v1922_v44 = vpop.f32.mrb[24].mxu1 }
 0x1f0   :  { %v1924_v45 = vpop.f32.mrb[25].mxu1 }
 0x1f3   :  { %v1926_v46 = vpop.f32.mrb[26].mxu1 }
 0x1f4   :  { %v1928_v47 = vpop.f32.mrb[27].mxu1 }
 0x1f7   :  { %v1930_v48 = vpop.f32.mrb[28].mxu1 }
 0x1f8   :  { %v1932_v49 = vpop.f32.mrb[29].mxu1 }
 0x1fb   :  { %v1934_v50 = vpop.f32.mrb[30].mxu1 }
 0x1fc   :  { %v1936_v51 = vpop.f32.mrb[31].mxu1 }
 0x1ff   :  { %v1448_v52 = vpop.f32.mrb[32].mxu1 }
 0x200   :  { %v780_v53 = vpop.f32.mrb[33].mxu1 }
 0x201   :  { %v1590_v54 = vpack.c.bf16 %v1448_v52, %v780_v53 }
 0x203   :  { %v1451_v55 = vpop.f32.mrb[34].mxu1  ;;  %1591 = vmatprep.subr.bf16.mxu0 %v1590_v54 }
 0x204   :  { %v790_v56 = vpop.f32.mrb[35].mxu1  ;;  %1593 = vmatpush3.bf16.msra.mxu0 %v1590_v54 }
 0x205   :  { %v1594_v57 = vpack.c.bf16 %v1451_v55, %v790_v56 }
 0x207   :  { %v1454_v58 = vpop.f32.mrb[36].mxu1  ;;  %1595 = vmatprep.subr.bf16.mxu0 %v1594_v57 }
 0x208   :  { %v800_v59 = vpop.f32.mrb[37].mxu1  ;;  %1597 = vmatpush3.bf16.msra.mxu0 %v1594_v57 }
 0x209   :  { %v1598_v60 = vpack.c.bf16 %v1454_v58, %v800_v59 }
 0x20b   :  { %v1457_v61 = vpop.f32.mrb[38].mxu1  ;;  %1599 = vmatprep.subr.bf16.mxu0 %v1598_v60 }
 0x20c   :  { %v810_v62 = vpop.f32.mrb[39].mxu1  ;;  %1601 = vmatpush3.bf16.msra.mxu0 %v1598_v60 }
 0x20d   :  { %v1602_v63 = vpack.c.bf16 %v1457_v61, %v810_v62 }
 0x20f   :  { %v1460_v0 = vpop.f32.mrb[40].mxu1  ;;  %1603 = vmatprep.subr.bf16.mxu0 %v1602_v63 }
 0x210   :  { %v820_v1 = vpop.f32.mrb[41].mxu1  ;;  %1605 = vmatpush3.bf16.msra.mxu0 %v1602_v63 }
 0x211   :  { %v1606_v2 = vpack.c.bf16 %v1460_v0, %v820_v1 }
 0x213   :  { %v1463_v3 = vpop.f32.mrb[42].mxu1  ;;  %1607 = vmatprep.subr.bf16.mxu0 %v1606_v2 }
 0x214   :  { %v830_v4 = vpop.f32.mrb[43].mxu1  ;;  %1609 = vmatpush3.bf16.msra.mxu0 %v1606_v2 }
 0x215   :  { %v1610_v5 = vpack.c.bf16 %v1463_v3, %v830_v4 }
 0x217   :  { %v1466_v6 = vpop.f32.mrb[44].mxu1  ;;  %1611 = vmatprep.subr.bf16.mxu0 %v1610_v5 }
 0x218   :  { %v840_v7 = vpop.f32.mrb[45].mxu1  ;;  %1613 = vmatpush3.bf16.msra.mxu0 %v1610_v5 }
 0x219   :  { %v1614_v8 = vpack.c.bf16 %v1466_v6, %v840_v7 }
 0x21b   :  { %v1469_v9 = vpop.f32.mrb[46].mxu1  ;;  %1615 = vmatprep.subr.bf16.mxu0 %v1614_v8 }
 0x21c   :  { %v850_v10 = vpop.f32.mrb[47].mxu1  ;;  %1617 = vmatpush3.bf16.msra.mxu0 %v1614_v8 }
 0x21d   :  { %v1618_v11 = vpack.c.bf16 %v1469_v9, %v850_v10 }
 0x21f   :  { %1619 = vmatprep.subr.bf16.mxu0 %v1618_v11 }
 0x220   :  { %1621 = vmatpush3.bf16.msra.mxu0 %v1618_v11 }
 0x223   :  { %1503 = vmatmul.mubr.f32.vlgmr.msra.gmra.mrb[16].mxu0 %v861_v12 }
 0x224   :  { %1505 = vmatprep.mubr.f32.mxu0 %v862_v13 }
 0x227   :  { %1506 = vmatmul.mubr.f32.gmra.mrb[18].mxu0 %v863_v14 }
 0x228   :  { %1508 = vmatprep.mubr.f32.mxu0 %v864_v15 }
 0x22b   :  { %1509 = vmatmul.mubr.f32.gmra.mrb[20].mxu0 %v865_v16 }
 0x22c   :  { %1511 = vmatprep.mubr.f32.mxu0 %v866_v17 }
 0x22f   :  { %1512 = vmatmul.mubr.f32.gmra.mrb[22].mxu0 %v867_v18 }
 0x230   :  { %1514 = vmatprep.mubr.f32.mxu0 %v868_v19 }
 0x233   :  { %1515 = vmatmul.mubr.f32.gmra.mrb[24].mxu0 %v869_v20 }
 0x234   :  { %1517 = vmatprep.mubr.f32.mxu0 %v870_v21 }
 0x237   :  { %1518 = vmatmul.mubr.f32.gmra.mrb[26].mxu0 %v871_v22 }
 0x238   :  { %1520 = vmatprep.mubr.f32.mxu0 %v872_v23 }
 0x23b   :  { %1521 = vmatmul.mubr.f32.gmra.mrb[28].mxu0 %v873_v24 }
 0x23c   :  { %1523 = vmatprep.mubr.f32.mxu0 %v874_v25 }
 0x23f   :  { %1524 = vmatmul.mubr.f32.gmra.mrb[30].mxu0 %v875_v26 }
 0x2f6   :  { %v1504_v27 = vpop.f32.mrb[16].mxu0 }
 0x2f7   :  { %v1622_v29 = vadd.f32 %v1504_v27, %v1906_v36  ;;  %v942_v30 = vpop.f32.mrb[17].mxu0 }
 0x2f8   :  { %v1623_v31 = vadd.f32 %v942_v30, %v1908_v37 }
 0x2f9   :  { %v1045_v32 = vadd.f32 %v1622_v29, %v1132_v28 }
 0x2fa   :  { %v1044_v33 = vadd.f32 %v1623_v31, %v1132_v28  ;;  %v1507_v34 = vpop.f32.mrb[18].mxu0 }
 0x2fb   :  { %1062 = vst.msk [vmem:[%s2025_s4 + $0x8] sm:$0xff] %vm1060_vm1, %v1045_v32  ;;  %v1624_v35 = vadd.f32 %v1507_v34, %v1910_v38  ;;  %v952_v52 = vpop.f32.mrb[19].mxu0 }
 0x2fc   :  { %1061 = vst.msk [vmem:[%s2025_s4] sm:$0xff] %vm1060_vm1, %v1044_v33  ;;  %v1625_v36 = vadd.f32 %v952_v52, %v1912_v39 }
 0x2fd   :  { %v1047_v53 = vadd.f32 %v1624_v35, %v1132_v28 }
 0x2fe   :  { %v1046_v37 = vadd.f32 %v1625_v36, %v1132_v28  ;;  %v1510_v54 = vpop.f32.mrb[20].mxu0 }
 0x2ff   :  { %1064 = vst.msk [vmem:[%s2025_s4 + $0x18] sm:$0xff] %vm1060_vm1, %v1047_v53  ;;  %v1626_v55 = vadd.f32 %v1510_v54, %v1914_v40  ;;  %v962_v56 = vpop.f32.mrb[21].mxu0 }
 0x300   :  { %1063 = vst.msk [vmem:[%s2025_s4 + $0x10] sm:$0xff] %vm1060_vm1, %v1046_v37  ;;  %v1627_v38 = vadd.f32 %v962_v56, %v1916_v41 }
 0x301   :  { %v1049_v57 = vadd.f32 %v1626_v55, %v1132_v28 }
 0x302   :  { %v1048_v39 = vadd.f32 %v1627_v38, %v1132_v28  ;;  %v1513_v58 = vpop.f32.mrb[22].mxu0 }
 0x303   :  { %1066 = vst.msk [vmem:[%s2025_s4 + $0x28] sm:$0xff] %vm1060_vm1, %v1049_v57  ;;  %v1628_v59 = vadd.f32 %v1513_v58, %v1918_v42  ;;  %v972_v60 = vpop.f32.mrb[23].mxu0 }
 0x304   :  { %1065 = vst.msk [vmem:[%s2025_s4 + $0x20] sm:$0xff] %vm1060_vm1, %v1048_v39  ;;  %v1629_v40 = vadd.f32 %v972_v60, %v1920_v43 }
 0x305   :  { %v1051_v61 = vadd.f32 %v1628_v59, %v1132_v28 }
 0x306   :  { %v1050_v41 = vadd.f32 %v1629_v40, %v1132_v28  ;;  %v1516_v62 = vpop.f32.mrb[24].mxu0 }
 0x307   :  { %1068 = vst.msk [vmem:[%s2025_s4 + $0x38] sm:$0xff] %vm1060_vm1, %v1051_v61  ;;  %v1630_v63 = vadd.f32 %v1516_v62, %v1922_v44  ;;  %v982_v0 = vpop.f32.mrb[25].mxu0 }
 0x308   :  { %1067 = vst.msk [vmem:[%s2025_s4 + $0x30] sm:$0xff] %vm1060_vm1, %v1050_v41  ;;  %v1631_v42 = vadd.f32 %v982_v0, %v1924_v45 }
 0x309   :  { %v1053_v1 = vadd.f32 %v1630_v63, %v1132_v28 }
 0x30a   :  { %v1052_v43 = vadd.f32 %v1631_v42, %v1132_v28  ;;  %v1519_v2 = vpop.f32.mrb[26].mxu0 }
 0x30b   :  { %1070 = vst.msk [vmem:[%s2025_s4 + $0x48] sm:$0xff] %vm1060_vm1, %v1053_v1  ;;  %v1632_v3 = vadd.f32 %v1519_v2, %v1926_v46  ;;  %v992_v4 = vpop.f32.mrb[27].mxu0 }
 0x30c   :  { %1069 = vst.msk [vmem:[%s2025_s4 + $0x40] sm:$0xff] %vm1060_vm1, %v1052_v43  ;;  %v1633_v44 = vadd.f32 %v992_v4, %v1928_v47 }
 0x30d   :  { %v1055_v5 = vadd.f32 %v1632_v3, %v1132_v28 }
 0x30e   :  { %v1054_v45 = vadd.f32 %v1633_v44, %v1132_v28  ;;  %v1522_v6 = vpop.f32.mrb[28].mxu0 }
 0x30f   :  { %1072 = vst.msk [vmem:[%s2025_s4 + $0x58] sm:$0xff] %vm1060_vm1, %v1055_v5  ;;  %v1634_v7 = vadd.f32 %v1522_v6, %v1930_v48  ;;  %v1002_v8 = vpop.f32.mrb[29].mxu0 }
 0x310   :  { %1071 = vst.msk [vmem:[%s2025_s4 + $0x50] sm:$0xff] %vm1060_vm1, %v1054_v45  ;;  %v1635_v46 = vadd.f32 %v1002_v8, %v1932_v49 }
 0x311   :  { %v1057_v9 = vadd.f32 %v1634_v7, %v1132_v28 }
 0x312   :  { %v1056_v47 = vadd.f32 %v1635_v46, %v1132_v28  ;;  %v1525_v10 = vpop.f32.mrb[30].mxu0 }
 0x313   :  { %1074 = vst.msk [vmem:[%s2025_s4 + $0x68] sm:$0xff] %vm1060_vm1, %v1057_v9  ;;  %v1636_v11 = vadd.f32 %v1525_v10, %v1934_v50  ;;  %v1012_v12 = vpop.f32.mrb[31].mxu0 }
 0x314   :  { %1073 = vst.msk [vmem:[%s2025_s4 + $0x60] sm:$0xff] %vm1060_vm1, %v1056_v47  ;;  %v1637_v48 = vadd.f32 %v1012_v12, %v1936_v51 }
 0x315   :  { %v1059_v13 = vadd.f32 %v1636_v11, %v1132_v28 }
 0x316   :  { %v1058_v49 = vadd.f32 %v1637_v48, %v1132_v28 }
 0x317   :  { %1076 = vst.msk [vmem:[%s2025_s4 + $0x78] sm:$0xff] %vm1060_vm1, %v1059_v13 }
 0x318   :  { %1075 = vst.msk [vmem:[%s2025_s4 + $0x70] sm:$0xff] %vm1060_vm1, %v1058_v49 }
 0x319   :  { %1081 = vsyncpa [#allocation3], 1 }

</bundles_post_ra>
